<compile_context>
chip_gen: v7x
topology: tpu7x:2x2x1
jax: 0.10.0
libtpu: 0.0.40
codegen_flags: <defaults>
</compile_context>

<pallas_src>
import jax
import jax.numpy as jnp
from jax.experimental import pallas as pl
from jax.experimental.pallas import tpu as pltpu


def _identity_copy_kernel(x_ref, o_ref):
    # Element-wise identity: one VMEM tile copy per grid step.
    o_ref[...] = x_ref[...]


# Per-block byte budget.  Input + output each double-buffered => 4x this must
# fit the default scoped VMEM on every generation (v5e = 16 MiB), so 2 MiB.
_BLOCK_BYTES = 2 * 1024 * 1024


def _sublane_align(itemsize: int) -> int:
    # Rows per packed sublane group: f32 -> 8, bf16 -> 16, int8/fp8 -> 32.
    return 8 * max(1, 4 // max(1, itemsize))


@jax.jit
def my_model_forward(x):
    """Pallas implementation of MyModel.forward(x) -> x (identity)."""
    orig_shape = x.shape
    dtype = x.dtype
    total = x.size
    if total == 0:
        return x

    itemsize = jnp.dtype(dtype).itemsize

    # Widest lane-dense last dim that divides the element count evenly.
    lanes = None
    for cand in (1024, 512, 256, 128):
        if total % cand == 0:
            lanes = cand
            break

    padded = False
    if lanes is None:
        # Ragged fallback (total % 128 != 0): pad flat to 128 lanes, sliced
        # off at the end.  Costs one extra pad/slice pass; unavoidable here.
        lanes = 128
        flat = jnp.pad(x.reshape(-1), (0, (-total) % lanes))
        x2d = flat.reshape(-1, lanes)
        padded = True
    else:
        x2d = x.reshape(-1, lanes)

    rows = x2d.shape[0]

    align = _sublane_align(itemsize)
    max_block_rows = max(align, (_BLOCK_BYTES // (lanes * itemsize)) // align * align)

    if rows <= max_block_rows:
        # Whole (small) array as a single full-dim block: grid=(1,).
        block_rows = rows
        grid = (1,)
    else:
        # Sublane-packed-aligned blocks; Pallas drops OOB writes in the
        # partial last block, so no wrapper-side row padding is needed.
        block_rows = max_block_rows
        grid = (pl.cdiv(rows, block_rows),)

    out2d = pl.pallas_call(
        _identity_copy_kernel,
        out_shape=jax.ShapeDtypeStruct((rows, lanes), dtype),
        grid=grid,
        in_specs=[pl.BlockSpec((block_rows, lanes), lambda i: (i, 0))],
        out_specs=pl.BlockSpec((block_rows, lanes), lambda i: (i, 0)),
        compiler_params=pltpu.CompilerParams(
            # Single axis "parallel" so v7x may shard blocks across its 2 TCs;
            # measured-neutral on v5e/v6e (shared HBM is the roofline anyway).
            dimension_semantics=("parallel",),
        ),
    )(x2d)

    if padded:
        return out2d.reshape(-1)[:total].reshape(orig_shape)
    return out2d.reshape(orig_shape)


if __name__ == "__main__":
    key = jax.random.PRNGKey(0)
    # Small NCHW-style input consistent with the module's forward.
    x = jax.random.normal(key, (2, 4, 16, 16), dtype=jnp.float32)

    y = my_model_forward(x)
    jax.block_until_ready(y)

    assert y.shape == x.shape and y.dtype == x.dtype
    assert bool(jnp.all(y == x))
    print("KERNEL_OK")
</pallas_src>

<mosaic_0001>
module attributes {stable_mosaic.version = 11 : i64} {
  func.func @_identity_copy_kernel(%arg0: i32, %arg1: memref<2x1024xf32, #tpu.memory_space<vmem>>, %arg2: memref<2x1024xf32, #tpu.memory_space<vmem>>) attributes {dimension_semantics = [#tpu.dimension_semantics<parallel>], iteration_bounds = array<i64: 1>, scalar_prefetch = 0 : i64, scratch_operands = 0 : i64, tpu.core_type = #tpu.core_type<tc>, window_params = [{transform_indices = @transform_0, window_bounds = array<i64: 2, 1024>}, {transform_indices = @transform_1, window_bounds = array<i64: 2, 1024>}]} {
    %c0 = arith.constant 0 : index
    %c0_0 = arith.constant 0 : index
    %0 = vector.load %arg1[%c0, %c0_0] : memref<2x1024xf32, #tpu.memory_space<vmem>>, vector<2x1024xf32>
    %c0_1 = arith.constant 0 : index
    %c0_2 = arith.constant 0 : index
    %1 = vector.load %arg2[%c0_1, %c0_2] : memref<2x1024xf32, #tpu.memory_space<vmem>>, vector<2x1024xf32>
    tpu.vector_store %arg2[%c0_1, %c0_2], %0 {strides = array<i32>} : memref<2x1024xf32, #tpu.memory_space<vmem>>, vector<2x1024xf32>,
    return
  }
  func.func @transform_0(%arg0: i32) -> (i32, i32) {
    %c0_i32 = arith.constant 0 : i32
    %c0_i32_0 = arith.constant 0 : i32
    return %arg0, %c0_i32 : i32, i32
  }
  func.func @transform_1(%arg0: i32) -> (i32, i32) {
    %c0_i32 = arith.constant 0 : i32
    %c0_i32_0 = arith.constant 0 : i32
    return %arg0, %c0_i32 : i32, i32
  }
}

</mosaic_0001>

<bundles_post_ra>
// kernel: my_model_forward.1
= control target key start
LH: loop header
LB: loop body
LE: loop exit
PB: predicated region body
PF: predicated region fallthrough
CT: control target
= control target key end

     0   :  { %s38_s0 = inlined_call_operand.vmem [shape: f32[2,1024], index: 0, kind: input, shape index: {}]   ;;  %s39_s1 = inlined_call_operand.vmem [shape: f32[2,1024], index: 1, kind: output, shape index: {}]  }
   0x1   :  { %v8_v0 = vld [vmem:[%s38_s0] sm:$0xff]  ;;  %v9_v1 = vld [vmem:[%s38_s0 + $0x8] sm:$0xff] }
   0x2   :  { %10 = vst [vmem:[%s39_s1] sm:$0xff] %v8_v0  ;;  %11 = vst [vmem:[%s39_s1 + $0x8] sm:$0xff] %v9_v1 }

</bundles_post_ra>
